<compile_context>
chip_gen: v5e
topology: v5e:2x2
jax: 0.10.0
libtpu: 0.0.40
codegen_flags: <defaults>
</compile_context>

<pallas_src>
import jax
import jax.numpy as jnp
from jax.experimental import pallas as pl
from jax.experimental.pallas import tpu as pltpu


def _mlp_kernel(x_ref, w1_ref, b1_ref, w2_ref, b2_ref, w3_ref, b3_ref, out_ref):
    # x_ref: (bm, Df) f32 -> cast to bf16 on the VPU right before the MXU.
    x = x_ref[...].astype(jnp.bfloat16)

    h = jnp.dot(x, w1_ref[...], preferred_element_type=jnp.float32) + b1_ref[...]
    h = jnp.maximum(h, 0.0)                                      # relu (f32)

    h = jnp.dot(h.astype(jnp.bfloat16), w2_ref[...],
                preferred_element_type=jnp.float32) + b2_ref[...]
    h = jnp.maximum(h, 0.0)                                      # relu

    y = jnp.dot(h.astype(jnp.bfloat16), w3_ref[...],
                preferred_element_type=jnp.float32) + b3_ref[...]

    out_ref[...] = y.astype(out_ref.dtype)                       # one store per block


def _round_up(v, m):
    return ((v + m - 1) // m) * m


def _vmem_budget_bytes():
    """Per-generation VMEM budget for this kernel's buffers (bytes)."""
    try:
        cap = int(pltpu.get_tpu_info().vmem_capacity_bytes)
    except Exception:
        cap = 64 * 1024 * 1024            # conservative: v7x has 64 MiB per TC
    # Leave headroom for Mosaic's own scratch; never ask for more than 96 MiB.
    return min((cap * 3) // 4, 96 * 1024 * 1024)


def _resident_weight_bytes(Df, hd, dim_out):
    # bf16 weights + f32 biases resident in VMEM.
    return 2 * (Df * hd + hd * Df + Df * dim_out) + 4 * (hd + Df + dim_out)


def _choose_block_rows(M, Df, dim_out, hd, vmem_budget):
    """Row-block size: as large as the VMEM budget allows (amortizes the
    ~0.35 us/grid-step overhead), 16-aligned, preferring an even number of
    >=2 grid steps so both v7x TensorCores get work."""
    m_al = _round_up(M, 16)
    per_row = 2 * Df * 4 + 2 * dim_out * 4          # double-buffered f32 in/out blocks
    avail = max(vmem_budget - 2 * _resident_weight_bytes(Df, hd, dim_out),
                per_row * 16)
    bm = min(2048, max(16, (avail // per_row) // 16 * 16), m_al)
    steps = -(-m_al // bm)
    if steps == 1 and m_al >= 64:
        bm = max(16, _round_up(m_al // 2, 16))                     # split for 2 TCs
    elif steps > 1 and steps % 2 == 1:
        bm = max(16, _round_up(-(-m_al // (steps + 1)), 16))       # even grid
    return bm


def attn_predictor_pallas(x, params):
    """Pallas forward of AttnPredictor.  x: (..., dim*64) f32 -> (..., dim) f32.

    params store weights as (in, out), i.e. the transpose of torch's
    nn.Linear.weight, so the forward is x @ W + b (same math as F.linear).
    """
    lead = x.shape[:-1]
    Df = x.shape[-1]
    hd = params["w1"].shape[1]
    dim_out = params["w3"].shape[1]
    assert params["w1"].shape[0] == Df

    x2 = x.reshape(-1, Df).astype(jnp.float32)      # free flatten; no pad, no copy
    M = x2.shape[0]

    budget = _vmem_budget_bytes()
    bm = _choose_block_rows(M, Df, dim_out, hd, budget)
    grid_m = pl.cdiv(M, bm)

    # bf16 MXU operands; f32 biases added to the f32 accumulators.
    w1 = params["w1"].astype(jnp.bfloat16)
    w2 = params["w2"].astype(jnp.bfloat16)
    w3 = params["w3"].astype(jnp.bfloat16)
    b1 = params["b1"].reshape(1, -1).astype(jnp.float32)
    b2 = params["b2"].reshape(1, -1).astype(jnp.float32)
    b3 = params["b3"].reshape(1, -1).astype(jnp.float32)

    cost = pl.CostEstimate(
        flops=2 * M * (Df * hd + hd * Df + Df * dim_out),
        transcendentals=0,
        bytes_accessed=M * Df * 4 + M * dim_out * 4
        + _resident_weight_bytes(Df, hd, dim_out),
    )

    def run(single_buffer_weights):
        if single_buffer_weights:
            # Grid-invariant blocks: fetched once; single-buffered to save VMEM.
            const = lambda shape: pl.BlockSpec(shape, lambda i: (0, 0),
                                               pipeline_mode=pl.Buffered(1))
        else:
            const = lambda shape: pl.BlockSpec(shape, lambda i: (0, 0))

        grid_spec = pltpu.PrefetchScalarGridSpec(
            num_scalar_prefetch=0,
            grid=(grid_m,),
            in_specs=[
                pl.BlockSpec((bm, Df), lambda i: (i, 0)),     # x row block (f32)
                const((Df, hd)), const((1, hd)),              # fc1
                const((hd, Df)), const((1, Df)),              # fc2
                const((Df, dim_out)), const((1, dim_out)),    # fc3
            ],
            out_specs=pl.BlockSpec((bm, dim_out), lambda i: (i, 0)),
        )
        return pl.pallas_call(
            _mlp_kernel,
            out_shape=jax.ShapeDtypeStruct((M, dim_out), jnp.float32),
            grid_spec=grid_spec,
            compiler_params=pltpu.CompilerParams(
                dimension_semantics=("parallel",),
                vmem_limit_bytes=budget,
            ),
            cost_estimate=cost,
        )(x2, w1, b1, w2, b2, w3, b3)

    try:
        out = run(True)
    except Exception:
        # Some Pallas versions reject pl.Buffered(1) on a top-level pallas_call
        # BlockSpec; double-buffered weights only cost a few tens of KiB here,
        # so fall back gracefully.
        out = run(False)

    return out.reshape(tuple(lead) + (dim_out,))


def ref_forward(x, params):
    """Pure-JAX f32 reference mirroring the torch forward."""
    h = jax.nn.relu(x @ params["w1"] + params["b1"])
    h = jax.nn.relu(h @ params["w2"] + params["b2"])
    return h @ params["w3"] + params["b3"]


def init_params(key, dim, hidden_dim):
    """Deterministic synthetic weights, stored as (in, out) — i.e. torch W.T."""
    Df = dim * 64
    ks = jax.random.split(key, 6)
    s = 0.05
    return {
        "w1": s * jax.random.normal(ks[0], (Df, hidden_dim), jnp.float32),
        "b1": s * jax.random.normal(ks[1], (hidden_dim,), jnp.float32),
        "w2": s * jax.random.normal(ks[2], (hidden_dim, Df), jnp.float32),
        "b2": s * jax.random.normal(ks[3], (Df,), jnp.float32),
        "w3": s * jax.random.normal(ks[4], (Df, dim), jnp.float32),
        "b3": s * jax.random.normal(ks[5], (dim,), jnp.float32),
    }


if __name__ == "__main__":
    # Small shapes implied by the module: dim=4 -> features dim*64=256,
    # hidden_dim=32, batch=2, seq=8 rows.
    dim, hidden_dim = 4, 32
    batch, seq = 2, 8
    Df = dim * 64

    key = jax.random.PRNGKey(0)
    kx, kp = jax.random.split(key)
    x = jax.random.normal(kx, (batch, seq, Df), jnp.float32)
    params = init_params(kp, dim, hidden_dim)

    out = attn_predictor_pallas(x, params)
    out = jax.block_until_ready(out)

    ref = ref_forward(x, params)
    assert out.shape == (batch, seq, dim), out.shape
    # bf16 MXU inputs (f32 accumulation) -> compare against the f32 reference
    # with a correspondingly loosened tolerance.
    max_err = jnp.max(jnp.abs(out - ref))
    assert jnp.allclose(out, ref, atol=2e-2, rtol=2e-2), f"max abs err {max_err}"

    print("KERNEL_OK")
</pallas_src>

<mosaic_0001>
module attributes {stable_mosaic.version = 11 : i64} {
  func.func @_mlp_kernel(%arg0: i32, %arg1: memref<16x256xf32, #tpu.memory_space<vmem>>, %arg2: memref<256x32xbf16, #tpu.memory_space<vmem>>, %arg3: memref<1x32xf32, #tpu.memory_space<vmem>>, %arg4: memref<32x256xbf16, #tpu.memory_space<vmem>>, %arg5: memref<1x256xf32, #tpu.memory_space<vmem>>, %arg6: memref<256x4xbf16, #tpu.memory_space<vmem>>, %arg7: memref<1x4xf32, #tpu.memory_space<vmem>>, %arg8: memref<16x4xf32, #tpu.memory_space<vmem>>) attributes {dimension_semantics = [#tpu.dimension_semantics<parallel>], iteration_bounds = array<i64: 1>, scalar_prefetch = 0 : i64, scratch_operands = 0 : i64, tpu.core_type = #tpu.core_type<tc>, window_params = [{transform_indices = @transform_0, window_bounds = array<i64: 16, 256>}, {pipeline_mode = #tpu.pipeline_mode<synchronous>, transform_indices = @transform_1, window_bounds = array<i64: 256, 32>}, {pipeline_mode = #tpu.pipeline_mode<synchronous>, transform_indices = @transform_2, window_bounds = array<i64: 1, 32>}, {pipeline_mode = #tpu.pipeline_mode<synchronous>, transform_indices = @transform_3, window_bounds = array<i64: 32, 256>}, {pipeline_mode = #tpu.pipeline_mode<synchronous>, transform_indices = @transform_4, window_bounds = array<i64: 1, 256>}, {pipeline_mode = #tpu.pipeline_mode<synchronous>, transform_indices = @transform_5, window_bounds = array<i64: 256, 4>}, {pipeline_mode = #tpu.pipeline_mode<synchronous>, transform_indices = @transform_6, window_bounds = array<i64: 1, 4>}, {transform_indices = @transform_7, window_bounds = array<i64: 16, 4>}]} {
    %c0 = arith.constant 0 : index
    %c0_0 = arith.constant 0 : index
    %0 = vector.load %arg1[%c0, %c0_0] : memref<16x256xf32, #tpu.memory_space<vmem>>, vector<16x256xf32>
    %1 = arith.truncf %0 : vector<16x256xf32> to vector<16x256xbf16>
    %c0_1 = arith.constant 0 : index
    %c0_2 = arith.constant 0 : index
    %2 = vector.load %arg2[%c0_1, %c0_2] : memref<256x32xbf16, #tpu.memory_space<vmem>>, vector<256x32xbf16>
    %cst = arith.constant dense<0.000000e+00> : vector<16x32xf32>
    %3 = tpu.matmul %1, %2, %cst {dimension_numbers = #tpu.dot_dimension_numbers<[1], [0], [0], [1], [0, 0, 1, 1], [], []>} : vector<16x256xbf16>, vector<256x32xbf16>, vector<16x32xf32> -> vector<16x32xf32>
    %c0_3 = arith.constant 0 : index
    %c0_4 = arith.constant 0 : index
    %4 = vector.load %arg3[%c0_3, %c0_4] : memref<1x32xf32, #tpu.memory_space<vmem>>, vector<1x32xf32>
    %5 = vector.broadcast %4 : vector<1x32xf32> to vector<16x32xf32>
    %6 = arith.addf %3, %5 : vector<16x32xf32>
    %cst_5 = arith.constant 0.000000e+00 : f32
    %7 = vector.broadcast %cst_5 : f32 to vector<16x32xf32>
    %8 = arith.maximumf %6, %7 : vector<16x32xf32>
    %9 = arith.truncf %8 : vector<16x32xf32> to vector<16x32xbf16>
    %c0_6 = arith.constant 0 : index
    %c0_7 = arith.constant 0 : index
    %10 = vector.load %arg4[%c0_6, %c0_7] : memref<32x256xbf16, #tpu.memory_space<vmem>>, vector<32x256xbf16>
    %cst_8 = arith.constant dense<0.000000e+00> : vector<16x256xf32>
    %11 = tpu.matmul %9, %10, %cst_8 {dimension_numbers = #tpu.dot_dimension_numbers<[1], [0], [0], [1], [0, 0, 1, 1], [], []>} : vector<16x32xbf16>, vector<32x256xbf16>, vector<16x256xf32> -> vector<16x256xf32>
    %c0_9 = arith.constant 0 : index
    %c0_10 = arith.constant 0 : index
    %12 = vector.load %arg5[%c0_9, %c0_10] : memref<1x256xf32, #tpu.memory_space<vmem>>, vector<1x256xf32>
    %13 = vector.broadcast %12 : vector<1x256xf32> to vector<16x256xf32>
    %14 = arith.addf %11, %13 : vector<16x256xf32>
    %cst_11 = arith.constant 0.000000e+00 : f32
    %15 = vector.broadcast %cst_11 : f32 to vector<16x256xf32>
    %16 = arith.maximumf %14, %15 : vector<16x256xf32>
    %17 = arith.truncf %16 : vector<16x256xf32> to vector<16x256xbf16>
    %c0_12 = arith.constant 0 : index
    %c0_13 = arith.constant 0 : index
    %18 = vector.load %arg6[%c0_12, %c0_13] : memref<256x4xbf16, #tpu.memory_space<vmem>>, vector<256x4xbf16>
    %cst_14 = arith.constant dense<0.000000e+00> : vector<16x4xf32>
    %19 = tpu.matmul %17, %18, %cst_14 {dimension_numbers = #tpu.dot_dimension_numbers<[1], [0], [0], [1], [0, 0, 1, 1], [], []>} : vector<16x256xbf16>, vector<256x4xbf16>, vector<16x4xf32> -> vector<16x4xf32>
    %c0_15 = arith.constant 0 : index
    %c0_16 = arith.constant 0 : index
    %20 = vector.load %arg7[%c0_15, %c0_16] : memref<1x4xf32, #tpu.memory_space<vmem>>, vector<1x4xf32>
    %21 = vector.broadcast %20 : vector<1x4xf32> to vector<16x4xf32>
    %22 = arith.addf %19, %21 : vector<16x4xf32>
    %c0_17 = arith.constant 0 : index
    %c0_18 = arith.constant 0 : index
    %23 = vector.load %arg8[%c0_17, %c0_18] : memref<16x4xf32, #tpu.memory_space<vmem>>, vector<16x4xf32>
    tpu.vector_store %arg8[%c0_17, %c0_18], %22 {strides = array<i32>} : memref<16x4xf32, #tpu.memory_space<vmem>>, vector<16x4xf32>,
    return
  }
  func.func @transform_0(%arg0: i32) -> (i32, i32) {
    %c0_i32 = arith.constant 0 : i32
    %c0_i32_0 = arith.constant 0 : i32
    return %arg0, %c0_i32 : i32, i32
  }
  func.func @transform_1(%arg0: i32) -> (i32, i32) {
    %c0_i32 = arith.constant 0 : i32
    %c0_i32_0 = arith.constant 0 : i32
    %c0_i32_1 = arith.constant 0 : i32
    return %c0_i32, %c0_i32_0 : i32, i32
  }
  func.func @transform_2(%arg0: i32) -> (i32, i32) {
    %c0_i32 = arith.constant 0 : i32
    %c0_i32_0 = arith.constant 0 : i32
    %c0_i32_1 = arith.constant 0 : i32
    return %c0_i32, %c0_i32_0 : i32, i32
  }
  func.func @transform_3(%arg0: i32) -> (i32, i32) {
    %c0_i32 = arith.constant 0 : i32
    %c0_i32_0 = arith.constant 0 : i32
    %c0_i32_1 = arith.constant 0 : i32
    return %c0_i32, %c0_i32_0 : i32, i32
  }
  func.func @transform_4(%arg0: i32) -> (i32, i32) {
    %c0_i32 = arith.constant 0 : i32
    %c0_i32_0 = arith.constant 0 : i32
    %c0_i32_1 = arith.constant 0 : i32
    return %c0_i32, %c0_i32_0 : i32, i32
  }
  func.func @transform_5(%arg0: i32) -> (i32, i32) {
    %c0_i32 = arith.constant 0 : i32
    %c0_i32_0 = arith.constant 0 : i32
    %c0_i32_1 = arith.constant 0 : i32
    return %c0_i32, %c0_i32_0 : i32, i32
  }
  func.func @transform_6(%arg0: i32) -> (i32, i32) {
    %c0_i32 = arith.constant 0 : i32
    %c0_i32_0 = arith.constant 0 : i32
    %c0_i32_1 = arith.constant 0 : i32
    return %c0_i32, %c0_i32_0 : i32, i32
  }
  func.func @transform_7(%arg0: i32) -> (i32, i32) {
    %c0_i32 = arith.constant 0 : i32
    %c0_i32_0 = arith.constant 0 : i32
    return %arg0, %c0_i32 : i32, i32
  }
}

module attributes {stable_mosaic.version = 11 : i64} {
  func.func @_mlp_kernel(%arg0: i32, %arg1: memref<16x256xf32, #tpu.memory_space<vmem>>, %arg2: memref<256x32xbf16, #tpu.memory_space<vmem>>, %arg3: memref<1x32xf32, #tpu.memory_space<vmem>>, %arg4: memref<32x256xbf16, #tpu.memory_space<vmem>>, %arg5: memref<1x256xf32, #tpu.memory_space<vmem>>, %arg6: memref<256x4xbf16, #tpu.memory_space<vmem>>, %arg7: memref<1x4xf32, #tpu.memory_space<vmem>>, %arg8: memref<16x4xf32, #tpu.memory_space<vmem>>) attributes {dimension_semantics = [#tpu.dimension_semantics<parallel>], iteration_bounds = array<i64: 1>, scalar_prefetch = 0 : i64, scratch_operands = 0 : i64, tpu.core_type = #tpu.core_type<tc>, window_params = [{transform_indices = @transform_0, window_bounds = array<i64: 16, 256>}, {pipeline_mode = #tpu.pipeline_mode<synchronous>, transform_indices = @transform_1, window_bounds = array<i64: 256, 32>}, {pipeline_mode = #tpu.pipeline_mode<synchronous>, transform_indices = @transform_2, window_bounds = array<i64: 1, 32>}, {pipeline_mode = #tpu.pipeline_mode<synchronous>, transform_indices = @transform_3, window_bounds = array<i64: 32, 256>}, {pipeline_mode = #tpu.pipeline_mode<synchronous>, transform_indices = @transform_4, window_bounds = array<i64: 1, 256>}, {pipeline_mode = #tpu.pipeline_mode<synchronous>, transform_indices = @transform_5, window_bounds = array<i64: 256, 4>}, {pipeline_mode = #tpu.pipeline_mode<synchronous>, transform_indices = @transform_6, window_bounds = array<i64: 1, 4>}, {transform_indices = @transform_7, window_bounds = array<i64: 16, 4>}]} {
    %c0 = arith.constant 0 : index
    %c0_0 = arith.constant 0 : index
    %0 = vector.load %arg1[%c0, %c0_0] : memref<16x256xf32, #tpu.memory_space<vmem>>, vector<16x256xf32>
    %1 = arith.truncf %0 : vector<16x256xf32> to vector<16x256xbf16>
    %c0_1 = arith.constant 0 : index
    %c0_2 = arith.constant 0 : index
    %2 = vector.load %arg2[%c0_1, %c0_2] : memref<256x32xbf16, #tpu.memory_space<vmem>>, vector<256x32xbf16>
    %cst = arith.constant dense<0.000000e+00> : vector<16x32xf32>
    %3 = tpu.matmul %1, %2, %cst {dimension_numbers = #tpu.dot_dimension_numbers<[1], [0], [0], [1], [0, 0, 1, 1], [], []>} : vector<16x256xbf16>, vector<256x32xbf16>, vector<16x32xf32> -> vector<16x32xf32>
    %c0_3 = arith.constant 0 : index
    %c0_4 = arith.constant 0 : index
    %4 = vector.load %arg3[%c0_3, %c0_4] : memref<1x32xf32, #tpu.memory_space<vmem>>, vector<1x32xf32>
    %5 = vector.broadcast %4 : vector<1x32xf32> to vector<16x32xf32>
    %6 = arith.addf %3, %5 : vector<16x32xf32>
    %cst_5 = arith.constant 0.000000e+00 : f32
    %7 = vector.broadcast %cst_5 : f32 to vector<16x32xf32>
    %8 = arith.maximumf %6, %7 : vector<16x32xf32>
    %9 = arith.truncf %8 : vector<16x32xf32> to vector<16x32xbf16>
    %c0_6 = arith.constant 0 : index
    %c0_7 = arith.constant 0 : index
    %10 = vector.load %arg4[%c0_6, %c0_7] : memref<32x256xbf16, #tpu.memory_space<vmem>>, vector<32x256xbf16>
    %cst_8 = arith.constant dense<0.000000e+00> : vector<16x256xf32>
    %11 = tpu.matmul %9, %10, %cst_8 {dimension_numbers = #tpu.dot_dimension_numbers<[1], [0], [0], [1], [0, 0, 1, 1], [], []>} : vector<16x32xbf16>, vector<32x256xbf16>, vector<16x256xf32> -> vector<16x256xf32>
    %c0_9 = arith.constant 0 : index
    %c0_10 = arith.constant 0 : index
    %12 = vector.load %arg5[%c0_9, %c0_10] : memref<1x256xf32, #tpu.memory_space<vmem>>, vector<1x256xf32>
    %13 = vector.broadcast %12 : vector<1x256xf32> to vector<16x256xf32>
    %14 = arith.addf %11, %13 : vector<16x256xf32>
    %cst_11 = arith.constant 0.000000e+00 : f32
    %15 = vector.broadcast %cst_11 : f32 to vector<16x256xf32>
    %16 = arith.maximumf %14, %15 : vector<16x256xf32>
    %17 = arith.truncf %16 : vector<16x256xf32> to vector<16x256xbf16>
    %c0_12 = arith.constant 0 : index
    %c0_13 = arith.constant 0 : index
    %18 = vector.load %arg6[%c0_12, %c0_13] : memref<256x4xbf16, #tpu.memory_space<vmem>>, vector<256x4xbf16>
    %cst_14 = arith.constant dense<0.000000e+00> : vector<16x4xf32>
    %19 = tpu.matmul %17, %18, %cst_14 {dimension_numbers = #tpu.dot_dimension_numbers<[1], [0], [0], [1], [0, 0, 1, 1], [], []>} : vector<16x256xbf16>, vector<256x4xbf16>, vector<16x4xf32> -> vector<16x4xf32>
    %c0_15 = arith.constant 0 : index
    %c0_16 = arith.constant 0 : index
    %20 = vector.load %arg7[%c0_15, %c0_16] : memref<1x4xf32, #tpu.memory_space<vmem>>, vector<1x4xf32>
    %21 = vector.broadcast %20 : vector<1x4xf32> to vector<16x4xf32>
    %22 = arith.addf %19, %21 : vector<16x4xf32>
    %c0_17 = arith.constant 0 : index
    %c0_18 = arith.constant 0 : index
    %23 = vector.load %arg8[%c0_17, %c0_18] : memref<16x4xf32, #tpu.memory_space<vmem>>, vector<16x4xf32>
    tpu.vector_store %arg8[%c0_17, %c0_18], %22 {strides = array<i32>} : memref<16x4xf32, #tpu.memory_space<vmem>>, vector<16x4xf32>,
    return
  }
  func.func @transform_0(%arg0: i32) -> (i32, i32) {
    %c0_i32 = arith.constant 0 : i32
    %c0_i32_0 = arith.constant 0 : i32
    return %arg0, %c0_i32 : i32, i32
  }
  func.func @transform_1(%arg0: i32) -> (i32, i32) {
    %c0_i32 = arith.constant 0 : i32
    %c0_i32_0 = arith.constant 0 : i32
    %c0_i32_1 = arith.constant 0 : i32
    return %c0_i32, %c0_i32_0 : i32, i32
  }
  func.func @transform_2(%arg0: i32) -> (i32, i32) {
    %c0_i32 = arith.constant 0 : i32
    %c0_i32_0 = arith.constant 0 : i32
    %c0_i32_1 = arith.constant 0 : i32
    return %c0_i32, %c0_i32_0 : i32, i32
  }
  func.func @transform_3(%arg0: i32) -> (i32, i32) {
    %c0_i32 = arith.constant 0 : i32
    %c0_i32_0 = arith.constant 0 : i32
    %c0_i32_1 = arith.constant 0 : i32
    return %c0_i32, %c0_i32_0 : i32, i32
  }
  func.func @transform_4(%arg0: i32) -> (i32, i32) {
    %c0_i32 = arith.constant 0 : i32
    %c0_i32_0 = arith.constant 0 : i32
    %c0_i32_1 = arith.constant 0 : i32
    return %c0_i32, %c0_i32_0 : i32, i32
  }
  func.func @transform_5(%arg0: i32) -> (i32, i32) {
    %c0_i32 = arith.constant 0 : i32
    %c0_i32_0 = arith.constant 0 : i32
    %c0_i32_1 = arith.constant 0 : i32
    return %c0_i32, %c0_i32_0 : i32, i32
  }
  func.func @transform_6(%arg0: i32) -> (i32, i32) {
    %c0_i32 = arith.constant 0 : i32
    %c0_i32_0 = arith.constant 0 : i32
    %c0_i32_1 = arith.constant 0 : i32
    return %c0_i32, %c0_i32_0 : i32, i32
  }
  func.func @transform_7(%arg0: i32) -> (i32, i32) {
    %c0_i32 = arith.constant 0 : i32
    %c0_i32_0 = arith.constant 0 : i32
    return %arg0, %c0_i32 : i32, i32
  }
}

</mosaic_0001>

<bundles_post_ra>
// kernel: tpu_custom_call.1
= control target key start
LH: loop header
LB: loop body
LE: loop exit
PB: predicated region body
PF: predicated region fallthrough
CT: control target
= control target key end

     0   :  { %vm226_vm0 = vcmask 261120   ;;  %vm424_vm1 = vcmask 31744   ;;  %s802_s1 = inlined_call_operand.vmem [shape: bf16[256,32], index: 1, kind: input, shape index: {}]   ;;  %s803_s2 = inlined_call_operand.vmem [shape: f32[1,32], index: 2, kind: input, shape index: {}]   ;;  %s804_s0 = inlined_call_operand.vmem [shape: f32[16,256], index: 0, kind: input, shape index: {}]   ;;  %s805_s3 = inlined_call_operand.vmem [shape: bf16[32,256], index: 3, kind: input, shape index: {}]   ;;  %s806_s5 = inlined_call_operand.vmem [shape: bf16[256,4], index: 5, kind: input, shape index: {}]   ;;  %s807_s6 = inlined_call_operand.vmem [shape: f32[1,4], index: 6, kind: input, shape index: {}]   ;;  %s808_s4 = inlined_call_operand.vmem [shape: f32[1,256], index: 4, kind: input, shape index: {}]   ;;  %s809_s7 = inlined_call_operand.vmem [shape: f32[16,4], index: 7, kind: output, shape index: {}]  }
   0x1   :  { %v584_v0 = vld [vmem:[%s802_s1 + $0x38] sm:$0xff]  ;;  %v583_v2 = vld [vmem:[%s802_s1 + $0x30] sm:$0xff]  ;;  %v582_v4 = vld [vmem:[%s802_s1 + $0x28] sm:$0xff] }
   0x2   :  { %v592_v1 = vld [vmem:[%s802_s1 + $0x78] sm:$0xff]  ;;  %165 = vmatpush.bf16.msra.mxu0 %v584_v0  ;;  %v591_v3 = vld [vmem:[%s802_s1 + $0x70] sm:$0xff]  ;;  %v590_v5 = vld [vmem:[%s802_s1 + $0x68] sm:$0xff] }
   0x3   :  { %179 = vmatpush.bf16.msra.mxu1 %v592_v1  ;;  %v581_v6 = vld [vmem:[%s802_s1 + $0x20] sm:$0xff]  ;;  %v580_v8 = vld [vmem:[%s802_s1 + $0x18] sm:$0xff]  ;;  %v579_v10 = vld [vmem:[%s802_s1 + $0x10] sm:$0xff] }
   0x4   :  { %v589_v7 = vld [vmem:[%s802_s1 + $0x60] sm:$0xff]  ;;  %v588_v9 = vld [vmem:[%s802_s1 + $0x58] sm:$0xff]  ;;  %v587_v11 = vld [vmem:[%s802_s1 + $0x50] sm:$0xff] }
   0x5   :  { %v578_v12 = vld [vmem:[%s802_s1 + $0x8] sm:$0xff]  ;;  %v577_v14 = vld [vmem:[%s802_s1] sm:$0xff]  ;;  %v29_v17 = vld [vmem:[%s804_s0 + $0x10] sm:$0xff] }
   0x6   :  { %166 = vmatpush.bf16.msra.mxu0 %v583_v2  ;;  %v586_v13 = vld [vmem:[%s802_s1 + $0x48] sm:$0xff]  ;;  %v585_v15 = vld [vmem:[%s802_s1 + $0x40] sm:$0xff]  ;;  %v30_v19 = vld [vmem:[%s804_s0 + $0x18] sm:$0xff] }
   0x7   :  { %180 = vmatpush.bf16.msra.mxu1 %v591_v3  ;;  %v27_v16 = vld [vmem:[%s804_s0] sm:$0xff]  ;;  %v28_v18 = vld [vmem:[%s804_s0 + $0x8] sm:$0xff]  ;;  %v505_v22 = vld [vmem:[%s805_s3 + $0x10] sm:$0xf] }
   0x8   :  { %v31_v20 = vpack.c.bf16 %v29_v17, %v27_v16  ;;  %v32_v21 = vpack.c.bf16 %v30_v19, %v28_v18  ;;  %v596_v23 = vld [vmem:[%s805_s3 + $0x14] sm:$0xf0]  ;;  %v595_v24 = vld [vmem:[%s805_s3 + $0x14] sm:$0xf]  ;;  %v507_v26 = vld [vmem:[%s805_s3 + $0x18] sm:$0xf0] }
   0x9   :  { %v506_v25 = vor.u32 %v596_v23, %v505_v22  ;;  %v510_v27 = vor.u32 %v595_v24, %v507_v26  ;;  %v497_v28 = vld [vmem:[%s805_s3] sm:$0xf]  ;;  %v594_v29 = vld [vmem:[%s805_s3 + $0x4] sm:$0xf0]  ;;  %v593_v30 = vld [vmem:[%s805_s3 + $0x4] sm:$0xf] }
   0xa   :  { %167 = vmatpush.bf16.msra.mxu0 %v582_v4  ;;  %v498_v31 = vor.u32 %v594_v29, %v497_v28  ;;  %v499_v32 = vld [vmem:[%s805_s3 + $0x8] sm:$0xf0]  ;;  %v604_v34 = vld [vmem:[%s806_s5 + $0x38] sm:$0xff]  ;;  %v603_v36 = vld [vmem:[%s806_s5 + $0x30] sm:$0xff] }
   0xb   :  { %181 = vmatpush.bf16.msra.mxu1 %v590_v5  ;;  %236 = vmatpush.bf16.msra.mxu2 %v506_v25  ;;  %v502_v33 = vor.u32 %v593_v30, %v499_v32  ;;  %v612_v35 = vld [vmem:[%s806_s5 + $0x78] sm:$0xff]  ;;  %v611_v37 = vld [vmem:[%s806_s5 + $0x70] sm:$0xff]  ;;  %v602_v38 = vld [vmem:[%s806_s5 + $0x28] sm:$0xff] }
   0xc   :  { %250 = vmatpush.bf16.msra.mxu3 %v510_v27  ;;  %v610_v39 = vld [vmem:[%s806_s5 + $0x68] sm:$0xff]  ;;  %v601_v40 = vld [vmem:[%s806_s5 + $0x20] sm:$0xff]  ;;  %v600_v54 = vld [vmem:[%s806_s5 + $0x18] sm:$0xff] }
   0xd   :  { %v609_v41 = vld [vmem:[%s806_s5 + $0x60] sm:$0xff]  ;;  %v608_v55 = vld [vmem:[%s806_s5 + $0x58] sm:$0xff]  ;;  %v599_v56 = vld [vmem:[%s806_s5 + $0x10] sm:$0xff] }
   0xe   :  { %168 = vmatpush.bf16.msra.mxu0 %v581_v6  ;;  %v613_v44 = vld [vmem:[%s803_s2] ss:$0 sm:$0xff]  ;;  %v607_v57 = vld [vmem:[%s806_s5 + $0x50] sm:$0xff]  ;;  %v598_v58 = vld [vmem:[%s806_s5 + $0x8] sm:$0xff] }
   0xf   :  { %182 = vmatpush.bf16.msra.mxu1 %v589_v7  ;;  %237 = vmatpush.bf16.msra.mxu2 %v498_v31  ;;  %v606_v59 = vld [vmem:[%s806_s5 + $0x48] sm:$0xff]  ;;  %v597_v60 = vld [vmem:[%s806_s5] sm:$0xff] }
  0x10   :  { %251 = vmatpush.bf16.msra.mxu3 %v502_v33  ;;  %v605_v61 = vld [vmem:[%s806_s5 + $0x40] sm:$0xff] }
  0x11   :  { %v200_v62 = vld [vmem:[%s808_s4] sm:$0x3] }
  0x12   :  { %169 = vmatpush.bf16.msra.mxu0 %v580_v8  ;;  %v202_v1 = vperm.slane %v200_v62, 0  ;;  %v203_v2 = vperm.slane %v200_v62, 1 }
  0x13   :  { %183 = vmatpush.bf16.msra.mxu1 %v588_v9  ;;  %396 = vmatpush.bf16.msrb.mxu2 %v604_v34 }
  0x14   :  { %410 = vmatpush.bf16.msrb.mxu3 %v612_v35 }
  0x16   :  { %170 = vmatpush.bf16.msra.mxu0 %v579_v10 }
  0x17   :  { %184 = vmatpush.bf16.msra.mxu1 %v587_v11  ;;  %397 = vmatpush.bf16.msrb.mxu2 %v603_v36 }
  0x18   :  { %411 = vmatpush.bf16.msrb.mxu3 %v611_v37 }
  0x1a   :  { %171 = vmatpush.bf16.msra.mxu0 %v578_v12 }
  0x1b   :  { %185 = vmatpush.bf16.msra.mxu1 %v586_v13  ;;  %398 = vmatpush.bf16.msrb.mxu2 %v602_v38 }
  0x1c   :  { %412 = vmatpush.bf16.msrb.mxu3 %v610_v39 }
  0x1e   :  { %172 = vmatpush.bf16.msra.mxu0 %v577_v14 }
  0x1f   :  { %186 = vmatpush.bf16.msra.mxu1 %v585_v15  ;;  %399 = vmatpush.bf16.msrb.mxu2 %v601_v40  ;;  %v614_v15 = vld [vmem:[%s807_s6] ss:$0 sm:$0xff] }
  0x20   :  { %413 = vmatpush.bf16.msrb.mxu3 %v609_v41 }
  0x21   :  { %173 = vmatmul.bf16.vlgmr.msra.gmra.mxu0 %v31_v20 }
  0x22   :  { %187 = vmatmul.bf16.vlgmr.msra.gmra.mxu1 %v32_v21 }
  0x23   :  { %400 = vmatpush.bf16.msrb.mxu2 %v600_v54 }
  0x24   :  { %414 = vmatpush.bf16.msrb.mxu3 %v608_v55 }
  0x27   :  { %401 = vmatpush.bf16.msrb.mxu2 %v599_v56 }
  0x28   :  { %415 = vmatpush.bf16.msrb.mxu3 %v607_v57 }
  0x2b   :  { %402 = vmatpush.bf16.msrb.mxu2 %v598_v58 }
  0x2c   :  { %416 = vmatpush.bf16.msrb.mxu3 %v606_v59 }
  0x2f   :  { %403 = vmatpush.bf16.msrb.mxu2 %v597_v60 }
  0x30   :  { %417 = vmatpush.bf16.msrb.mxu3 %v605_v61 }
  0x9e   :  { %v174_v42 = vpop.f32.mrf.mxu0 }
  0x9f   :  { %v188_v43 = vpop.f32.mrf.mxu1  ;;  %v175_v45 = vadd.f32 %v613_v44, %v174_v42 }
  0xa1   :  { %v189_v47 = vadd.f32 %v188_v43, %v175_v45 }
  0xa3   :  { %v193_v51 = vmax.f32 %v189_v47, 0.0 }
  0xa6   :  { %v176_v46 = vpop.f32.mrf.mxu0 }
  0xa7   :  { %v177_v48 = vadd.f32 %v613_v44, %v176_v46  ;;  %v190_v49 = vpop.f32.mrf.mxu1 }
  0xa9   :  { %v191_v50 = vadd.f32 %v190_v49, %v177_v48 }
  0xab   :  { %v194_v52 = vmax.f32 %v191_v50, 0.0 }
  0xad   :  { %v195_v53 = vpack.c.bf16 %v194_v52, %v193_v51 }
  0xaf   :  { %511 = vmatmul.msk.bf16.vlgmr.msra.gmra.mxu2 %vm226_vm0, %v195_v53  ;;  %512 = vmatmul.msk.bf16.vlgmr.msra.gmra.mxu3 %vm226_vm0, %v195_v53 }
 0x132   :  { %v239_v63 = vpop.f32.mrf.mxu2  ;;  %v253_v0 = vpop.f32.mrf.mxu3 }
 0x133   :  { %v240_v3 = vadd.f32 %v239_v63, %v202_v1  ;;  %v254_v4 = vadd.f32 %v253_v0, %v203_v2 }
 0x135   :  { %v258_v9 = vmax.f32 %v240_v3, 0.0  ;;  %v259_v10 = vmax.f32 %v254_v4, 0.0 }
 0x13a   :  { %v241_v5 = vpop.f32.mrf.mxu2  ;;  %v255_v6 = vpop.f32.mrf.mxu3 }
 0x13b   :  { %v242_v7 = vadd.f32 %v241_v5, %v202_v1  ;;  %v256_v8 = vadd.f32 %v255_v6, %v203_v2 }
 0x13d   :  { %v260_v11 = vmax.f32 %v242_v7, 0.0  ;;  %v261_v12 = vmax.f32 %v256_v8, 0.0 }
 0x13f   :  { %v262_v13 = vpack.c.bf16 %v260_v11, %v258_v9  ;;  %v263_v14 = vpack.c.bf16 %v261_v12, %v259_v10 }
 0x141   :  { %404 = vmatmul.bf16.vlgmr.msrb.gmra.mxu2 %v262_v13  ;;  %418 = vmatmul.bf16.vlgmr.msrb.gmra.mxu3 %v263_v14 }
 0x1c4   :  { %v405_v16 = vpop.f32.mrf.mxu2  ;;  %v419_v17 = vpop.f32.mrf.mxu3 }
 0x1c5   :  { %v406_v18 = vadd.f32 %v614_v15, %v405_v16 }
 0x1c7   :  { %v420_v19 = vadd.f32 %v419_v17, %v406_v18 }
 0x1c9   :  { %425 = vst.msk [vmem:[%s809_s7] sm:$0xff] %vm424_vm1, %v420_v19 }
 0x1cc   :  { %v407_v20 = vpop.f32.mrf.mxu2  ;;  %v421_v22 = vpop.f32.mrf.mxu3 }
 0x1cd   :  { %v408_v21 = vadd.f32 %v614_v15, %v407_v20 }
 0x1cf   :  { %v422_v23 = vadd.f32 %v421_v22, %v408_v21 }
 0x1d1   :  { %426 = vst.msk [vmem:[%s809_s7 + $0x8] sm:$0xff] %vm424_vm1, %v422_v23 }

// kernel: tpu_custom_call.1
= control target key start
LH: loop header
LB: loop body
LE: loop exit
PB: predicated region body
PF: predicated region fallthrough
CT: control target
= control target key end

     0   :  { %vm226_vm0 = vcmask 261120   ;;  %vm424_vm1 = vcmask 31744   ;;  %s802_s1 = inlined_call_operand.vmem [shape: bf16[256,32], index: 1, kind: input, shape index: {}]   ;;  %s803_s2 = inlined_call_operand.vmem [shape: f32[1,32], index: 2, kind: input, shape index: {}]   ;;  %s804_s0 = inlined_call_operand.vmem [shape: f32[16,256], index: 0, kind: input, shape index: {}]   ;;  %s805_s3 = inlined_call_operand.vmem [shape: bf16[32,256], index: 3, kind: input, shape index: {}]   ;;  %s806_s5 = inlined_call_operand.vmem [shape: bf16[256,4], index: 5, kind: input, shape index: {}]   ;;  %s807_s6 = inlined_call_operand.vmem [shape: f32[1,4], index: 6, kind: input, shape index: {}]   ;;  %s808_s4 = inlined_call_operand.vmem [shape: f32[1,256], index: 4, kind: input, shape index: {}]   ;;  %s809_s7 = inlined_call_operand.vmem [shape: f32[16,4], index: 7, kind: output, shape index: {}]  }
   0x1   :  { %v584_v0 = vld [vmem:[%s802_s1 + $0x38] sm:$0xff]  ;;  %v583_v2 = vld [vmem:[%s802_s1 + $0x30] sm:$0xff]  ;;  %v582_v4 = vld [vmem:[%s802_s1 + $0x28] sm:$0xff] }
   0x2   :  { %v592_v1 = vld [vmem:[%s802_s1 + $0x78] sm:$0xff]  ;;  %165 = vmatpush.bf16.msra.mxu0 %v584_v0  ;;  %v591_v3 = vld [vmem:[%s802_s1 + $0x70] sm:$0xff]  ;;  %v590_v5 = vld [vmem:[%s802_s1 + $0x68] sm:$0xff] }
   0x3   :  { %179 = vmatpush.bf16.msra.mxu1 %v592_v1  ;;  %v581_v6 = vld [vmem:[%s802_s1 + $0x20] sm:$0xff]  ;;  %v580_v8 = vld [vmem:[%s802_s1 + $0x18] sm:$0xff]  ;;  %v579_v10 = vld [vmem:[%s802_s1 + $0x10] sm:$0xff] }
   0x4   :  { %v589_v7 = vld [vmem:[%s802_s1 + $0x60] sm:$0xff]  ;;  %v588_v9 = vld [vmem:[%s802_s1 + $0x58] sm:$0xff]  ;;  %v587_v11 = vld [vmem:[%s802_s1 + $0x50] sm:$0xff] }
   0x5   :  { %v578_v12 = vld [vmem:[%s802_s1 + $0x8] sm:$0xff]  ;;  %v577_v14 = vld [vmem:[%s802_s1] sm:$0xff]  ;;  %v29_v17 = vld [vmem:[%s804_s0 + $0x10] sm:$0xff] }
   0x6   :  { %166 = vmatpush.bf16.msra.mxu0 %v583_v2  ;;  %v586_v13 = vld [vmem:[%s802_s1 + $0x48] sm:$0xff]  ;;  %v585_v15 = vld [vmem:[%s802_s1 + $0x40] sm:$0xff]  ;;  %v30_v19 = vld [vmem:[%s804_s0 + $0x18] sm:$0xff] }
   0x7   :  { %180 = vmatpush.bf16.msra.mxu1 %v591_v3  ;;  %v27_v16 = vld [vmem:[%s804_s0] sm:$0xff]  ;;  %v28_v18 = vld [vmem:[%s804_s0 + $0x8] sm:$0xff]  ;;  %v505_v22 = vld [vmem:[%s805_s3 + $0x10] sm:$0xf] }
   0x8   :  { %v31_v20 = vpack.c.bf16 %v29_v17, %v27_v16  ;;  %v32_v21 = vpack.c.bf16 %v30_v19, %v28_v18  ;;  %v596_v23 = vld [vmem:[%s805_s3 + $0x14] sm:$0xf0]  ;;  %v595_v24 = vld [vmem:[%s805_s3 + $0x14] sm:$0xf]  ;;  %v507_v26 = vld [vmem:[%s805_s3 + $0x18] sm:$0xf0] }
   0x9   :  { %v506_v25 = vor.u32 %v596_v23, %v505_v22  ;;  %v510_v27 = vor.u32 %v595_v24, %v507_v26  ;;  %v497_v28 = vld [vmem:[%s805_s3] sm:$0xf]  ;;  %v594_v29 = vld [vmem:[%s805_s3 + $0x4] sm:$0xf0]  ;;  %v593_v30 = vld [vmem:[%s805_s3 + $0x4] sm:$0xf] }
   0xa   :  { %167 = vmatpush.bf16.msra.mxu0 %v582_v4  ;;  %v498_v31 = vor.u32 %v594_v29, %v497_v28  ;;  %v499_v32 = vld [vmem:[%s805_s3 + $0x8] sm:$0xf0]  ;;  %v604_v34 = vld [vmem:[%s806_s5 + $0x38] sm:$0xff]  ;;  %v603_v36 = vld [vmem:[%s806_s5 + $0x30] sm:$0xff] }
   0xb   :  { %181 = vmatpush.bf16.msra.mxu1 %v590_v5  ;;  %236 = vmatpush.bf16.msra.mxu2 %v506_v25  ;;  %v502_v33 = vor.u32 %v593_v30, %v499_v32  ;;  %v612_v35 = vld [vmem:[%s806_s5 + $0x78] sm:$0xff]  ;;  %v611_v37 = vld [vmem:[%s806_s5 + $0x70] sm:$0xff]  ;;  %v602_v38 = vld [vmem:[%s806_s5 + $0x28] sm:$0xff] }
   0xc   :  { %250 = vmatpush.bf16.msra.mxu3 %v510_v27  ;;  %v610_v39 = vld [vmem:[%s806_s5 + $0x68] sm:$0xff]  ;;  %v601_v40 = vld [vmem:[%s806_s5 + $0x20] sm:$0xff]  ;;  %v600_v54 = vld [vmem:[%s806_s5 + $0x18] sm:$0xff] }
   0xd   :  { %v609_v41 = vld [vmem:[%s806_s5 + $0x60] sm:$0xff]  ;;  %v608_v55 = vld [vmem:[%s806_s5 + $0x58] sm:$0xff]  ;;  %v599_v56 = vld [vmem:[%s806_s5 + $0x10] sm:$0xff] }
   0xe   :  { %168 = vmatpush.bf16.msra.mxu0 %v581_v6  ;;  %v613_v44 = vld [vmem:[%s803_s2] ss:$0 sm:$0xff]  ;;  %v607_v57 = vld [vmem:[%s806_s5 + $0x50] sm:$0xff]  ;;  %v598_v58 = vld [vmem:[%s806_s5 + $0x8] sm:$0xff] }
   0xf   :  { %182 = vmatpush.bf16.msra.mxu1 %v589_v7  ;;  %237 = vmatpush.bf16.msra.mxu2 %v498_v31  ;;  %v606_v59 = vld [vmem:[%s806_s5 + $0x48] sm:$0xff]  ;;  %v597_v60 = vld [vmem:[%s806_s5] sm:$0xff] }
  0x10   :  { %251 = vmatpush.bf16.msra.mxu3 %v502_v33  ;;  %v605_v61 = vld [vmem:[%s806_s5 + $0x40] sm:$0xff] }
  0x11   :  { %v200_v62 = vld [vmem:[%s808_s4] sm:$0x3] }
  0x12   :  { %169 = vmatpush.bf16.msra.mxu0 %v580_v8  ;;  %v202_v1 = vperm.slane %v200_v62, 0  ;;  %v203_v2 = vperm.slane %v200_v62, 1 }
  0x13   :  { %183 = vmatpush.bf16.msra.mxu1 %v588_v9  ;;  %396 = vmatpush.bf16.msrb.mxu2 %v604_v34 }
  0x14   :  { %410 = vmatpush.bf16.msrb.mxu3 %v612_v35 }
  0x16   :  { %170 = vmatpush.bf16.msra.mxu0 %v579_v10 }
  0x17   :  { %184 = vmatpush.bf16.msra.mxu1 %v587_v11  ;;  %397 = vmatpush.bf16.msrb.mxu2 %v603_v36 }
  0x18   :  { %411 = vmatpush.bf16.msrb.mxu3 %v611_v37 }
  0x1a   :  { %171 = vmatpush.bf16.msra.mxu0 %v578_v12 }
  0x1b   :  { %185 = vmatpush.bf16.msra.mxu1 %v586_v13  ;;  %398 = vmatpush.bf16.msrb.mxu2 %v602_v38 }
  0x1c   :  { %412 = vmatpush.bf16.msrb.mxu3 %v610_v39 }
  0x1e   :  { %172 = vmatpush.bf16.msra.mxu0 %v577_v14 }
  0x1f   :  { %186 = vmatpush.bf16.msra.mxu1 %v585_v15  ;;  %399 = vmatpush.bf16.msrb.mxu2 %v601_v40  ;;  %v614_v15 = vld [vmem:[%s807_s6] ss:$0 sm:$0xff] }
  0x20   :  { %413 = vmatpush.bf16.msrb.mxu3 %v609_v41 }
  0x21   :  { %173 = vmatmul.bf16.vlgmr.msra.gmra.mxu0 %v31_v20 }
  0x22   :  { %187 = vmatmul.bf16.vlgmr.msra.gmra.mxu1 %v32_v21 }
  0x23   :  { %400 = vmatpush.bf16.msrb.mxu2 %v600_v54 }
  0x24   :  { %414 = vmatpush.bf16.msrb.mxu3 %v608_v55 }
  0x27   :  { %401 = vmatpush.bf16.msrb.mxu2 %v599_v56 }
  0x28   :  { %415 = vmatpush.bf16.msrb.mxu3 %v607_v57 }
  0x2b   :  { %402 = vmatpush.bf16.msrb.mxu2 %v598_v58 }
  0x2c   :  { %416 = vmatpush.bf16.msrb.mxu3 %v606_v59 }
  0x2f   :  { %403 = vmatpush.bf16.msrb.mxu2 %v597_v60 }
  0x30   :  { %417 = vmatpush.bf16.msrb.mxu3 %v605_v61 }
  0x9e   :  { %v174_v42 = vpop.f32.mrf.mxu0 }
  0x9f   :  { %v188_v43 = vpop.f32.mrf.mxu1  ;;  %v175_v45 = vadd.f32 %v613_v44, %v174_v42 }
  0xa1   :  { %v189_v47 = vadd.f32 %v188_v43, %v175_v45 }
  0xa3   :  { %v193_v51 = vmax.f32 %v189_v47, 0.0 }
  0xa6   :  { %v176_v46 = vpop.f32.mrf.mxu0 }
  0xa7   :  { %v177_v48 = vadd.f32 %v613_v44, %v176_v46  ;;  %v190_v49 = vpop.f32.mrf.mxu1 }
  0xa9   :  { %v191_v50 = vadd.f32 %v190_v49, %v177_v48 }
  0xab   :  { %v194_v52 = vmax.f32 %v191_v50, 0.0 }
  0xad   :  { %v195_v53 = vpack.c.bf16 %v194_v52, %v193_v51 }
  0xaf   :  { %511 = vmatmul.msk.bf16.vlgmr.msra.gmra.mxu2 %vm226_vm0, %v195_v53  ;;  %512 = vmatmul.msk.bf16.vlgmr.msra.gmra.mxu3 %vm226_vm0, %v195_v53 }
 0x132   :  { %v239_v63 = vpop.f32.mrf.mxu2  ;;  %v253_v0 = vpop.f32.mrf.mxu3 }
 0x133   :  { %v240_v3 = vadd.f32 %v239_v63, %v202_v1  ;;  %v254_v4 = vadd.f32 %v253_v0, %v203_v2 }
 0x135   :  { %v258_v9 = vmax.f32 %v240_v3, 0.0  ;;  %v259_v10 = vmax.f32 %v254_v4, 0.0 }
 0x13a   :  { %v241_v5 = vpop.f32.mrf.mxu2  ;;  %v255_v6 = vpop.f32.mrf.mxu3 }
 0x13b   :  { %v242_v7 = vadd.f32 %v241_v5, %v202_v1  ;;  %v256_v8 = vadd.f32 %v255_v6, %v203_v2 }
 0x13d   :  { %v260_v11 = vmax.f32 %v242_v7, 0.0  ;;  %v261_v12 = vmax.f32 %v256_v8, 0.0 }
 0x13f   :  { %v262_v13 = vpack.c.bf16 %v260_v11, %v258_v9  ;;  %v263_v14 = vpack.c.bf16 %v261_v12, %v259_v10 }
 0x141   :  { %404 = vmatmul.bf16.vlgmr.msrb.gmra.mxu2 %v262_v13  ;;  %418 = vmatmul.bf16.vlgmr.msrb.gmra.mxu3 %v263_v14 }
 0x1c4   :  { %v405_v16 = vpop.f32.mrf.mxu2  ;;  %v419_v17 = vpop.f32.mrf.mxu3 }
 0x1c5   :  { %v406_v18 = vadd.f32 %v614_v15, %v405_v16 }
 0x1c7   :  { %v420_v19 = vadd.f32 %v419_v17, %v406_v18 }
 0x1c9   :  { %425 = vst.msk [vmem:[%s809_s7] sm:$0xff] %vm424_vm1, %v420_v19 }
 0x1cc   :  { %v407_v20 = vpop.f32.mrf.mxu2  ;;  %v421_v22 = vpop.f32.mrf.mxu3 }
 0x1cd   :  { %v408_v21 = vadd.f32 %v614_v15, %v407_v20 }
 0x1cf   :  { %v422_v23 = vadd.f32 %v421_v22, %v408_v21 }
 0x1d1   :  { %426 = vst.msk [vmem:[%s809_s7 + $0x8] sm:$0xff] %vm424_vm1, %v422_v23 }

</bundles_post_ra>
